<compile_context>
chip_gen: v7x
topology: tpu7x:2x2x1
jax: 0.10.0
libtpu: 0.0.40
codegen_flags: <defaults>
</compile_context>

<pallas_src>
import jax
import jax.numpy as jnp
from jax.experimental import pallas as pl
from jax.experimental.pallas import tpu as pltpu

BN_EPS = 1e-5
LANE = 128
SUBLANE = 8


def _round_up(n, m):
    return ((n + m - 1) // m) * m


def _vmem_capacity_bytes():
    """Physical VMEM of the current chip; conservative fallback if unknown."""
    try:
        info = pltpu.get_tpu_info()
        cap = getattr(info, "vmem_capacity_bytes", None)
        if cap:
            return int(cap)
    except Exception:
        pass
    return 64 * 1024 * 1024  # v7x-sized (smallest) => safe everywhere


# ---------------------------------------------------------------------------
# Kernel
# ---------------------------------------------------------------------------
def _predictor_kernel(
    x_ref,          # (TB, IN_P)      batch tile (BN1 pre-folded into w1/b1)
    w1_ref, b1_ref, # (IN_P, H_P), (1, H_P)   BN1-folded fc1
    w2_ref, b2_ref, # (H_P, H_P),  (1, H_P)   BN2-folded fc2
    s3_ref, t3_ref, # (1, H_P), (1, H_P)      BN3 scale / shift
    w3_ref, b3_ref, # (H_P, OUT_P), (1, OUT_P) fc3
    logits_ref,     # (TB, OUT_P)
    rep_ref,        # (TB, H_P)
):
    x = x_ref[...]

    # fc1 (BN1 folded in) + relu
    h = jnp.dot(x, w1_ref[...], preferred_element_type=jnp.float32) + b1_ref[...]
    h = jnp.maximum(h, 0.0)

    # fc2 (BN2 folded in) + relu
    r = jnp.dot(h, w2_ref[...], preferred_element_type=jnp.float32) + b2_ref[...]
    r = jnp.maximum(r, 0.0)

    # BN3 as precomputed scale/shift (dropout = identity in eval mode)
    rep = r * s3_ref[...] + t3_ref[...]

    # fc3
    logits = jnp.dot(rep, w3_ref[...], preferred_element_type=jnp.float32) + b3_ref[...]

    logits_ref[...] = logits.astype(logits_ref.dtype)
    rep_ref[...] = rep.astype(rep_ref.dtype)


# ---------------------------------------------------------------------------
# Parameter preparation: fold BN1/BN2 into the linear layers, precompute BN3
# scale/shift, zero-pad every feature axis to a multiple of 128 lanes.
# ---------------------------------------------------------------------------
def _pad2(a, rows, cols):
    return jnp.pad(a, ((0, rows - a.shape[0]), (0, cols - a.shape[1])))


def _prepare_params(p, in_p, h_p, out_p):
    # BN1 folded into fc1
    s1 = p["bn1_g"] * jax.lax.rsqrt(p["bn1_v"] + BN_EPS)          # (1, in)
    t1 = p["bn1_b"] - p["bn1_m"] * s1                              # (1, in)
    w1f = p["w1"] * s1[0][:, None]                                 # (in, hid)
    b1f = p["b1"] + t1 @ p["w1"]                                   # (1, hid)

    # BN2 folded into fc2
    s2 = p["bn2_g"] * jax.lax.rsqrt(p["bn2_v"] + BN_EPS)
    t2 = p["bn2_b"] - p["bn2_m"] * s2
    w2f = p["w2"] * s2[0][:, None]
    b2f = p["b2"] + t2 @ p["w2"]

    # BN3 stays (rep output is post-BN3) -> precomputed scale/shift only
    s3 = p["bn3_g"] * jax.lax.rsqrt(p["bn3_v"] + BN_EPS)
    t3 = p["bn3_b"] - p["bn3_m"] * s3

    return dict(
        w1=_pad2(w1f, in_p, h_p), b1=_pad2(b1f, 1, h_p),
        w2=_pad2(w2f, h_p, h_p),  b2=_pad2(b2f, 1, h_p),
        s3=_pad2(s3, 1, h_p),     t3=_pad2(t3, 1, h_p),
        w3=_pad2(p["w3"], h_p, out_p), b3=_pad2(p["b3"], 1, out_p),
    )


# ---------------------------------------------------------------------------
# Wrapper
# ---------------------------------------------------------------------------
def predictor_forward(x, params, *, max_block_b=1024):
    """x: (B, input_dim) float32. params: dict of arrays (see init_params)."""
    B, input_dim = x.shape
    hidden_dim = params["w2"].shape[1]
    output_dim = params["w3"].shape[1]

    in_p = _round_up(input_dim, LANE)
    h_p = _round_up(hidden_dim, LANE)
    out_p = _round_up(output_dim, LANE)

    prep = _prepare_params(params, in_p, h_p, out_p)

    # ---- generation-aware batch-tile selection (v7x: 64 MiB VMEM) ----
    cap = _vmem_capacity_bytes()
    weight_bytes = 4 * (in_p * h_p + h_p * h_p + h_p * out_p + 4 * h_p + out_p)
    # per batch row: x (x2 for double buffer) + h intermediate + rep (x2) + logits (x2)
    per_row_bytes = 4 * (2 * in_p + 3 * h_p + 2 * out_p)
    budget = int(cap * 0.4)  # leave headroom for scratch / compiler internals
    max_rows = max(SUBLANE, ((budget - weight_bytes) // per_row_bytes) // SUBLANE * SUBLANE)
    tb = int(max(SUBLANE, min(max_block_b, max_rows, _round_up(B, SUBLANE))))

    # Pad the batch to a whole number of tiles (tail tile would otherwise be garbage)
    b_p = _round_up(B, tb)
    x_p = jnp.pad(x.astype(jnp.float32), ((0, b_p - B), (0, in_p - input_dim)))
    grid = (b_p // tb,)

    vmem_limit = int(min(cap * 0.85,
                         max(32 * 1024 * 1024,
                             weight_bytes + tb * per_row_bytes + (16 << 20))))

    flops = 2 * b_p * (in_p * h_p + h_p * h_p + h_p * out_p)
    bytes_accessed = 4 * b_p * (in_p + h_p + out_p) + weight_bytes

    const = lambda i: (0, 0)     # weights / BN vectors stay VMEM-resident
    tile = lambda i: (i, 0)      # batch-tiled activations

    logits_p, rep_p = pl.pallas_call(
        _predictor_kernel,
        out_shape=(
            jax.ShapeDtypeStruct((b_p, out_p), jnp.float32),
            jax.ShapeDtypeStruct((b_p, h_p), jnp.float32),
        ),
        grid=grid,
        in_specs=[
            pl.BlockSpec((tb, in_p), tile),      # x
            pl.BlockSpec((in_p, h_p), const),    # w1
            pl.BlockSpec((1, h_p), const),       # b1
            pl.BlockSpec((h_p, h_p), const),     # w2
            pl.BlockSpec((1, h_p), const),       # b2
            pl.BlockSpec((1, h_p), const),       # s3
            pl.BlockSpec((1, h_p), const),       # t3
            pl.BlockSpec((h_p, out_p), const),   # w3
            pl.BlockSpec((1, out_p), const),     # b3
        ],
        out_specs=(
            pl.BlockSpec((tb, out_p), tile),     # logits
            pl.BlockSpec((tb, h_p), tile),       # rep
        ),
        compiler_params=pltpu.CompilerParams(
            dimension_semantics=("parallel",),   # v7x: shard batch across 2 TCs
            vmem_limit_bytes=vmem_limit,
        ),
        cost_estimate=pl.CostEstimate(
            flops=flops, bytes_accessed=bytes_accessed, transcendentals=0
        ),
    )(
        x_p,
        prep["w1"], prep["b1"],
        prep["w2"], prep["b2"],
        prep["s3"], prep["t3"],
        prep["w3"], prep["b3"],
    )

    return logits_p[:B, :output_dim], rep_p[:B, :hidden_dim]


# ---------------------------------------------------------------------------
# Synthetic parameters + pure-JAX reference (eval-mode semantics)
# ---------------------------------------------------------------------------
def init_params(key, input_dim, hidden_dim, output_dim):
    ks = jax.random.split(key, 12)

    def linear(kw, kb, fan_in, fan_out):
        # PyTorch Linear default init; weight stored pre-transposed (in, out).
        bound = 1.0 / jnp.sqrt(fan_in)
        w = jax.random.uniform(kw, (fan_in, fan_out), jnp.float32, -bound, bound)
        b = jax.random.uniform(kb, (1, fan_out), jnp.float32, -bound, bound)
        return w, b

    def bn(kg, kb, dim):
        g = 1.0 + 0.1 * jax.random.normal(kg, (1, dim), jnp.float32)
        b = 0.1 * jax.random.normal(kb, (1, dim), jnp.float32)
        m = 0.05 * jax.random.normal(jax.random.fold_in(kg, 1), (1, dim), jnp.float32)
        v = 1.0 + 0.1 * jax.random.uniform(jax.random.fold_in(kb, 1), (1, dim), jnp.float32)
        return g, b, m, v

    w1, b1 = linear(ks[0], ks[1], input_dim, hidden_dim)
    w2, b2 = linear(ks[2], ks[3], hidden_dim, hidden_dim)
    w3, b3 = linear(ks[4], ks[5], hidden_dim, output_dim)
    g1, bb1, m1, v1 = bn(ks[6], ks[7], input_dim)
    g2, bb2, m2, v2 = bn(ks[8], ks[9], hidden_dim)
    g3, bb3, m3, v3 = bn(ks[10], ks[11], hidden_dim)

    return dict(
        w1=w1, b1=b1, w2=w2, b2=b2, w3=w3, b3=b3,
        bn1_g=g1, bn1_b=bb1, bn1_m=m1, bn1_v=v1,
        bn2_g=g2, bn2_b=bb2, bn2_m=m2, bn2_v=v2,
        bn3_g=g3, bn3_b=bb3, bn3_m=m3, bn3_v=v3,
    )


def predictor_ref(x, p):
    def bn(x, g, b, m, v):
        return (x - m) * jax.lax.rsqrt(v + BN_EPS) * g + b
    x = bn(x, p["bn1_g"], p["bn1_b"], p["bn1_m"], p["bn1_v"])
    h = jnp.maximum(x @ p["w1"] + p["b1"], 0.0)
    h = bn(h, p["bn2_g"], p["bn2_b"], p["bn2_m"], p["bn2_v"])
    rep = jnp.maximum(h @ p["w2"] + p["b2"], 0.0)
    rep = bn(rep, p["bn3_g"], p["bn3_b"], p["bn3_m"], p["bn3_v"])
    logits = rep @ p["w3"] + p["b3"]
    return logits, rep


if __name__ == "__main__":
    batch, input_dim, hidden_dim, output_dim = 8, 32, 32, 4

    key = jax.random.PRNGKey(0)
    kx, kp = jax.random.split(key)
    x = jax.random.normal(kx, (batch, input_dim), jnp.float32)
    params = init_params(kp, input_dim, hidden_dim, output_dim)

    logits, rep = jax.block_until_ready(predictor_forward(x, params))

    ref_logits, ref_rep = predictor_ref(x, params)
    assert logits.shape == (batch, output_dim) and rep.shape == (batch, hidden_dim)
    assert jnp.allclose(logits, ref_logits, atol=1e-4, rtol=1e-4)
    assert jnp.allclose(rep, ref_rep, atol=1e-4, rtol=1e-4)

    print("KERNEL_OK")
</pallas_src>

<mosaic_0001>
module attributes {stable_mosaic.version = 11 : i64} {
  func.func @_predictor_kernel(%arg0: i32, %arg1: memref<8x128xf32, #tpu.memory_space<vmem>>, %arg2: memref<128x128xf32, #tpu.memory_space<vmem>>, %arg3: memref<1x128xf32, #tpu.memory_space<vmem>>, %arg4: memref<128x128xf32, #tpu.memory_space<vmem>>, %arg5: memref<1x128xf32, #tpu.memory_space<vmem>>, %arg6: memref<1x128xf32, #tpu.memory_space<vmem>>, %arg7: memref<1x128xf32, #tpu.memory_space<vmem>>, %arg8: memref<128x128xf32, #tpu.memory_space<vmem>>, %arg9: memref<1x128xf32, #tpu.memory_space<vmem>>, %arg10: memref<8x128xf32, #tpu.memory_space<vmem>>, %arg11: memref<8x128xf32, #tpu.memory_space<vmem>>) attributes {dimension_semantics = [#tpu.dimension_semantics<parallel>], iteration_bounds = array<i64: 1>, scalar_prefetch = 0 : i64, scratch_operands = 0 : i64, tpu.core_type = #tpu.core_type<tc>, window_params = [{transform_indices = @transform_0, window_bounds = array<i64: 8, 128>}, {pipeline_mode = #tpu.pipeline_mode<synchronous>, transform_indices = @transform_1, window_bounds = array<i64: 128, 128>}, {pipeline_mode = #tpu.pipeline_mode<synchronous>, transform_indices = @transform_2, window_bounds = array<i64: 1, 128>}, {pipeline_mode = #tpu.pipeline_mode<synchronous>, transform_indices = @transform_3, window_bounds = array<i64: 128, 128>}, {pipeline_mode = #tpu.pipeline_mode<synchronous>, transform_indices = @transform_4, window_bounds = array<i64: 1, 128>}, {pipeline_mode = #tpu.pipeline_mode<synchronous>, transform_indices = @transform_5, window_bounds = array<i64: 1, 128>}, {pipeline_mode = #tpu.pipeline_mode<synchronous>, transform_indices = @transform_6, window_bounds = array<i64: 1, 128>}, {pipeline_mode = #tpu.pipeline_mode<synchronous>, transform_indices = @transform_7, window_bounds = array<i64: 128, 128>}, {pipeline_mode = #tpu.pipeline_mode<synchronous>, transform_indices = @transform_8, window_bounds = array<i64: 1, 128>}, {transform_indices = @transform_9, window_bounds = array<i64: 8, 128>}, {transform_indices = @transform_10, window_bounds = array<i64: 8, 128>}]} {
    %c0 = arith.constant 0 : index
    %c0_0 = arith.constant 0 : index
    %0 = vector.load %arg1[%c0, %c0_0] : memref<8x128xf32, #tpu.memory_space<vmem>>, vector<8x128xf32>
    %c0_1 = arith.constant 0 : index
    %c0_2 = arith.constant 0 : index
    %1 = vector.load %arg2[%c0_1, %c0_2] : memref<128x128xf32, #tpu.memory_space<vmem>>, vector<128x128xf32>
    %cst = arith.constant dense<0.000000e+00> : vector<8x128xf32>
    %2 = tpu.matmul %0, %1, %cst {dimension_numbers = #tpu.dot_dimension_numbers<[1], [0], [0], [1], [0, 0, 1, 1], [], []>} : vector<8x128xf32>, vector<128x128xf32>, vector<8x128xf32> -> vector<8x128xf32>
    %c0_3 = arith.constant 0 : index
    %c0_4 = arith.constant 0 : index
    %3 = vector.load %arg3[%c0_3, %c0_4] : memref<1x128xf32, #tpu.memory_space<vmem>>, vector<1x128xf32>
    %4 = vector.broadcast %3 : vector<1x128xf32> to vector<8x128xf32>
    %5 = arith.addf %2, %4 : vector<8x128xf32>
    %cst_5 = arith.constant 0.000000e+00 : f32
    %6 = vector.broadcast %cst_5 : f32 to vector<8x128xf32>
    %7 = arith.maximumf %5, %6 : vector<8x128xf32>
    %c0_6 = arith.constant 0 : index
    %c0_7 = arith.constant 0 : index
    %8 = vector.load %arg4[%c0_6, %c0_7] : memref<128x128xf32, #tpu.memory_space<vmem>>, vector<128x128xf32>
    %cst_8 = arith.constant dense<0.000000e+00> : vector<8x128xf32>
    %9 = tpu.matmul %7, %8, %cst_8 {dimension_numbers = #tpu.dot_dimension_numbers<[1], [0], [0], [1], [0, 0, 1, 1], [], []>} : vector<8x128xf32>, vector<128x128xf32>, vector<8x128xf32> -> vector<8x128xf32>
    %c0_9 = arith.constant 0 : index
    %c0_10 = arith.constant 0 : index
    %10 = vector.load %arg5[%c0_9, %c0_10] : memref<1x128xf32, #tpu.memory_space<vmem>>, vector<1x128xf32>
    %11 = vector.broadcast %10 : vector<1x128xf32> to vector<8x128xf32>
    %12 = arith.addf %9, %11 : vector<8x128xf32>
    %cst_11 = arith.constant 0.000000e+00 : f32
    %13 = vector.broadcast %cst_11 : f32 to vector<8x128xf32>
    %14 = arith.maximumf %12, %13 : vector<8x128xf32>
    %c0_12 = arith.constant 0 : index
    %c0_13 = arith.constant 0 : index
    %15 = vector.load %arg6[%c0_12, %c0_13] : memref<1x128xf32, #tpu.memory_space<vmem>>, vector<1x128xf32>
    %16 = vector.broadcast %15 : vector<1x128xf32> to vector<8x128xf32>
    %17 = arith.mulf %14, %16 : vector<8x128xf32>
    %c0_14 = arith.constant 0 : index
    %c0_15 = arith.constant 0 : index
    %18 = vector.load %arg7[%c0_14, %c0_15] : memref<1x128xf32, #tpu.memory_space<vmem>>, vector<1x128xf32>
    %19 = vector.broadcast %18 : vector<1x128xf32> to vector<8x128xf32>
    %20 = arith.addf %17, %19 : vector<8x128xf32>
    %c0_16 = arith.constant 0 : index
    %c0_17 = arith.constant 0 : index
    %21 = vector.load %arg8[%c0_16, %c0_17] : memref<128x128xf32, #tpu.memory_space<vmem>>, vector<128x128xf32>
    %cst_18 = arith.constant dense<0.000000e+00> : vector<8x128xf32>
    %22 = tpu.matmul %20, %21, %cst_18 {dimension_numbers = #tpu.dot_dimension_numbers<[1], [0], [0], [1], [0, 0, 1, 1], [], []>} : vector<8x128xf32>, vector<128x128xf32>, vector<8x128xf32> -> vector<8x128xf32>
    %c0_19 = arith.constant 0 : index
    %c0_20 = arith.constant 0 : index
    %23 = vector.load %arg9[%c0_19, %c0_20] : memref<1x128xf32, #tpu.memory_space<vmem>>, vector<1x128xf32>
    %24 = vector.broadcast %23 : vector<1x128xf32> to vector<8x128xf32>
    %25 = arith.addf %22, %24 : vector<8x128xf32>
    %c0_21 = arith.constant 0 : index
    %c0_22 = arith.constant 0 : index
    %26 = vector.load %arg10[%c0_21, %c0_22] : memref<8x128xf32, #tpu.memory_space<vmem>>, vector<8x128xf32>
    tpu.vector_store %arg10[%c0_21, %c0_22], %25 {strides = array<i32>} : memref<8x128xf32, #tpu.memory_space<vmem>>, vector<8x128xf32>,
    %c0_23 = arith.constant 0 : index
    %c0_24 = arith.constant 0 : index
    %27 = vector.load %arg11[%c0_23, %c0_24] : memref<8x128xf32, #tpu.memory_space<vmem>>, vector<8x128xf32>
    tpu.vector_store %arg11[%c0_23, %c0_24], %20 {strides = array<i32>} : memref<8x128xf32, #tpu.memory_space<vmem>>, vector<8x128xf32>,
    return
  }
  func.func @transform_0(%arg0: i32) -> (i32, i32) {
    %c0_i32 = arith.constant 0 : i32
    %c0_i32_0 = arith.constant 0 : i32
    return %arg0, %c0_i32 : i32, i32
  }
  func.func @transform_1(%arg0: i32) -> (i32, i32) {
    %c0_i32 = arith.constant 0 : i32
    %c0_i32_0 = arith.constant 0 : i32
    %c0_i32_1 = arith.constant 0 : i32
    return %c0_i32, %c0_i32_0 : i32, i32
  }
  func.func @transform_2(%arg0: i32) -> (i32, i32) {
    %c0_i32 = arith.constant 0 : i32
    %c0_i32_0 = arith.constant 0 : i32
    %c0_i32_1 = arith.constant 0 : i32
    return %c0_i32, %c0_i32_0 : i32, i32
  }
  func.func @transform_3(%arg0: i32) -> (i32, i32) {
    %c0_i32 = arith.constant 0 : i32
    %c0_i32_0 = arith.constant 0 : i32
    %c0_i32_1 = arith.constant 0 : i32
    return %c0_i32, %c0_i32_0 : i32, i32
  }
  func.func @transform_4(%arg0: i32) -> (i32, i32) {
    %c0_i32 = arith.constant 0 : i32
    %c0_i32_0 = arith.constant 0 : i32
    %c0_i32_1 = arith.constant 0 : i32
    return %c0_i32, %c0_i32_0 : i32, i32
  }
  func.func @transform_5(%arg0: i32) -> (i32, i32) {
    %c0_i32 = arith.constant 0 : i32
    %c0_i32_0 = arith.constant 0 : i32
    %c0_i32_1 = arith.constant 0 : i32
    return %c0_i32, %c0_i32_0 : i32, i32
  }
  func.func @transform_6(%arg0: i32) -> (i32, i32) {
    %c0_i32 = arith.constant 0 : i32
    %c0_i32_0 = arith.constant 0 : i32
    %c0_i32_1 = arith.constant 0 : i32
    return %c0_i32, %c0_i32_0 : i32, i32
  }
  func.func @transform_7(%arg0: i32) -> (i32, i32) {
    %c0_i32 = arith.constant 0 : i32
    %c0_i32_0 = arith.constant 0 : i32
    %c0_i32_1 = arith.constant 0 : i32
    return %c0_i32, %c0_i32_0 : i32, i32
  }
  func.func @transform_8(%arg0: i32) -> (i32, i32) {
    %c0_i32 = arith.constant 0 : i32
    %c0_i32_0 = arith.constant 0 : i32
    %c0_i32_1 = arith.constant 0 : i32
    return %c0_i32, %c0_i32_0 : i32, i32
  }
  func.func @transform_9(%arg0: i32) -> (i32, i32) {
    %c0_i32 = arith.constant 0 : i32
    %c0_i32_0 = arith.constant 0 : i32
    return %arg0, %c0_i32 : i32, i32
  }
  func.func @transform_10(%arg0: i32) -> (i32, i32) {
    %c0_i32 = arith.constant 0 : i32
    %c0_i32_0 = arith.constant 0 : i32
    return %arg0, %c0_i32 : i32, i32
  }
}

</mosaic_0001>

<bundles_post_ra>
// kernel: tpu_custom_call.1
= control target key start
LH: loop header
LB: loop body
LE: loop exit
PB: predicated region body
PF: predicated region fallthrough
CT: control target
= control target key end

     0   :  { %16 = vsyncpa [#allocation3], 0  ;;  %s998_s0 = inlined_call_operand.hbm [shape: f32[8,128], index: 0, kind: input, shape index: {}]   ;;  %s999_s1 = inlined_call_operand.hbm [shape: f32[128,128], index: 1, kind: input, shape index: {}]   ;;  %s1000_s2 = inlined_call_operand.vmem [shape: f32[1,128], index: 2, kind: input, shape index: {}]   ;;  %s1001_s3 = inlined_call_operand.hbm [shape: f32[128,128], index: 3, kind: input, shape index: {}]   ;;  %s1002_s4 = inlined_call_operand.vmem [shape: f32[1,128], index: 4, kind: input, shape index: {}]   ;;  %s1003_s5 = inlined_call_operand.vmem [shape: f32[1,128], index: 5, kind: input, shape index: {}]   ;;  %s1004_s6 = inlined_call_operand.vmem [shape: f32[1,128], index: 6, kind: input, shape index: {}]   ;;  %s1005_s7 = inlined_call_operand.hbm [shape: f32[128,128], index: 7, kind: input, shape index: {}]   ;;  %s1006_s8 = inlined_call_operand.vmem [shape: f32[1,128], index: 8, kind: input, shape index: {}]   ;;  %s1007_s9 = inlined_call_operand.hbm [shape: f32[8,128], index: 9, kind: output, shape index: {0}]   ;;  %s1008_s10 = inlined_call_operand.hbm [shape: f32[8,128], index: 10, kind: output, shape index: {1}]  }
   0x1   :  { %17 = vsyncpa [#allocation6], 0 }
   0x2   :  { %18 = vsyncpa [#allocation9], 0 }
   0x3   :  { %19 = vsyncpa [#allocation4], 0 }
   0x4   :  { %20 = vsyncpa [#allocation12], 0  ;;  %s806_s13 = smov [#allocation5]   ;;  %s664_s17 = scalar_lea.hbm %s999_s1, 2048 }
   0x5   :  { %s36_s14 = sshll.u32 %s806_s13, 4  ;;  %p665_p0 = scmp.ne.s32.totalorder %s999_s1, %s664_s17  ;;  %s37_s14 = int_to_ptr.vmem [resolvable:$true] %s36_s14 }
   0x6   :  { %p668_p1 = scmp.lt.u32.totalorder %s664_s17, %s999_s1 }
   0x8   :  { %p670_p2 = pnand %p668_p1, %p665_p0 }
   0xa   :  { %673 = shalt.err (!%p670_p2)
}
   0xb   :  { %s674_s22 = scalar_lea.vmem %s37_s14, 2048  ;;  %p679_p4 = scmp.lt.s32.totalorder %s37_s14, %s37_s14 }
   0xc   :  { %p675_p3 = scmp.ne.s32.totalorder %s37_s14, %s674_s22  ;;  %p680_p5 = scmp.lt.s32.totalorder %s674_s22, %s674_s22 }
   0xe   :  { %p681_p6 = por %p680_p5, %p679_p4 }
  0x10   :  { %p682_p7 = pnand %p681_p6, %p675_p3 }
  0x12   :  { %685 = shalt.err (!%p682_p7)
}
  0x13   :  { %s807_s23 = smov 128   ;;  %s808_s24 = smov 8  }
  0x14   :  { %42 = dma.hbm_to_vmem [thread:$0]  %s999_s1, 2048, %s37_s14, [#allocation6], %s807_s23, %s807_s23, %s808_s24  }
  0x15   :  { %s809_s27 = smov [#allocation2]   ;;  %s810_s29 = smov [#allocation7]  }
  0x16   :  { %s27_s28 = sshll.u32 %s809_s27, 4  ;;  %s50_s30 = sshll.u32 %s810_s29, 4  ;;  %s28_s28 = int_to_ptr.vmem [resolvable:$true] %s27_s28  ;;  %s51_s30 = int_to_ptr.vmem [resolvable:$true] %s50_s30 }
  0x17   :  { %s686_s13 = scalar_lea.hbm %s998_s0, 128 }
  0x18   :  { %p687_p8 = scmp.ne.s32.totalorder %s998_s0, %s686_s13  ;;  %p690_p9 = scmp.lt.u32.totalorder %s686_s13, %s998_s0 }
  0x1a   :  { %p692_p10 = pnand %p690_p9, %p687_p8 }
  0x1c   :  { %695 = shalt.err (!%p692_p10)
}
  0x1d   :  { %s696_s1 = scalar_lea.vmem %s28_s28, 128  ;;  %p701_p12 = scmp.lt.s32.totalorder %s28_s28, %s28_s28 }
  0x1e   :  { %p697_p11 = scmp.ne.s32.totalorder %s28_s28, %s696_s1  ;;  %p702_p13 = scmp.lt.s32.totalorder %s696_s1, %s696_s1 }
  0x20   :  { %p703_p0 = por %p702_p13, %p701_p12 }
  0x22   :  { %p704_p1 = pnand %p703_p0, %p697_p11 }
  0x24   :  { %707 = shalt.err (!%p704_p1)
}
  0x25   :  { %30 = dma.hbm_to_vmem [thread:$0]  %s998_s0, 128, %s28_s28, [#allocation3]  }
  0x26   :  { %s708_s22 = scalar_lea.hbm %s1001_s3, 2048 }
  0x27   :  { %p709_p2 = scmp.ne.s32.totalorder %s1001_s3, %s708_s22  ;;  %p712_p3 = scmp.lt.u32.totalorder %s708_s22, %s1001_s3 }
  0x29   :  { %p714_p4 = pnand %p712_p3, %p709_p2 }
  0x2b   :  { %717 = shalt.err (!%p714_p4)
}
  0x2c   :  { %s718_s11 = scalar_lea.vmem %s51_s30, 2048  ;;  %p723_p6 = scmp.lt.s32.totalorder %s51_s30, %s51_s30 }
  0x2d   :  { %p719_p5 = scmp.ne.s32.totalorder %s51_s30, %s718_s11  ;;  %p724_p7 = scmp.lt.s32.totalorder %s718_s11, %s718_s11 }
  0x2f   :  { %p725_p8 = por %p724_p7, %p723_p6 }
  0x31   :  { %p726_p9 = pnand %p725_p8, %p719_p5 }
  0x33   :  { %729 = shalt.err (!%p726_p9)
}
  0x34   :  { %56 = dma.hbm_to_vmem [thread:$0]  %s1001_s3, 2048, %s51_s30, [#allocation6], %s807_s23, %s807_s23, %s808_s24  }
  0x35   :  { %s811_s12 = smov [#allocation8]   ;;  %s730_s17 = scalar_lea.hbm %s1005_s7, 2048 }
  0x36   :  { %s68_s13 = sshll.u32 %s811_s12, 4  ;;  %p731_p10 = scmp.ne.s32.totalorder %s1005_s7, %s730_s17  ;;  %s69_s13 = int_to_ptr.vmem [resolvable:$true] %s68_s13 }
  0x37   :  { %p734_p11 = scmp.lt.u32.totalorder %s730_s17, %s1005_s7 }
  0x39   :  { %p736_p12 = pnand %p734_p11, %p731_p10 }
  0x3b   :  { %739 = shalt.err (!%p736_p12)
}
  0x3c   :  { %s740_s20 = scalar_lea.vmem %s69_s13, 2048  ;;  %p745_p0 = scmp.lt.s32.totalorder %s69_s13, %s69_s13 }
  0x3d   :  { %p741_p13 = scmp.ne.s32.totalorder %s69_s13, %s740_s20  ;;  %p746_p1 = scmp.lt.s32.totalorder %s740_s20, %s740_s20 }
  0x3f   :  { %p747_p2 = por %p746_p1, %p745_p0 }
  0x41   :  { %p748_p3 = pnand %p747_p2, %p741_p13 }
  0x43   :  { %751 = shalt.err (!%p748_p3)
}
  0x44   :  { %74 = dma.hbm_to_vmem [thread:$0]  %s1005_s7, 2048, %s69_s13, [#allocation9], %s807_s23, %s807_s23, %s808_s24  }
  0x45   :  { %796 = dma.done.wait [#allocation3], 128  }
  0x46   :  { %797 = vsyncadd [#allocation3], 4294967168 }
  0x47   :  { %798 = dma.done.wait [#allocation6], 4096  }
  0x48   :  { %799 = vsyncadd [#allocation6], 4294963200 }
  0x49   :  { %800 = dma.done.wait [#allocation9], 2048  }
  0x4a   :  { %801 = vsyncadd [#allocation9], 4294965248  ;;  %v812_v0 = vmov 0.0|0.0   ;;  %vm813_vm0 = vmmov 0   ;;  %v814_v1 = vmov 0.0   ;;  %v90_v2 = vld [vmem:[#allocation5] sm:$0xff] }
  0x4b   :  { %581 = vmatprep.subr.bf16.mxu0 %v812_v0  ;;  %508 = vmatprep.mubr.msk.f32.mxu0 %vm813_vm0, %v814_v1  ;;  %v91_v3 = vld [vmem:[#allocation5 + $0x8] sm:$0xff]  ;;  %v92_v4 = vld [vmem:[#allocation5 + $0x10] sm:$0xff]  ;;  %v93_v6 = vld [vmem:[#allocation5 + $0x18] sm:$0xff]  ;;  %s815_s27 = smov [#allocation11]  }
  0x4c   :  { %605 = vmatprep.subr.bf16.mxu1 %v812_v0  ;;  %543 = vmatprep.mubr.msk.f32.mxu1 %vm813_vm0, %v814_v1  ;;  %v582_v5 = vpack.c.bf16 %v91_v3, %v90_v2  ;;  %v585_v7 = vpack.c.bf16 %v93_v6, %v92_v4  ;;  %v94_v8 = vld [vmem:[#allocation5 + $0x20] sm:$0xff]  ;;  %v95_v9 = vld [vmem:[#allocation5 + $0x28] sm:$0xff]  ;;  %v186_v12 = vld [vmem:[#allocation7 + $0x10] sm:$0xff]  ;;  %s405_s29 = sshll.u32 %s815_s27, 4  ;;  %s406_s29 = int_to_ptr.vmem [resolvable:$true] %s405_s29 }
  0x4d   :  { %v184_v10 = vld [vmem:[#allocation7] sm:$0xff]  ;;  %v185_v11 = vld [vmem:[#allocation7 + $0x8] sm:$0xff]  ;;  %v187_v13 = vld [vmem:[#allocation7 + $0x18] sm:$0xff]  ;;  %v588_v14 = vpack.c.bf16 %v95_v9, %v94_v8  ;;  %p757_p5 = scmp.lt.s32.totalorder %s406_s29, %s406_s29 }
  0x4e   :  { %583 = vmatpush3.bf16.msra.mxu0 %v582_v5  ;;  %v606_v15 = vpack.c.bf16 %v185_v11, %v184_v10  ;;  %v96_v16 = vld [vmem:[#allocation5 + $0x30] sm:$0xff]  ;;  %v97_v17 = vld [vmem:[#allocation5 + $0x38] sm:$0xff]  ;;  %v609_v18 = vpack.c.bf16 %v187_v13, %v186_v12  ;;  %v188_v19 = vld [vmem:[#allocation7 + $0x20] sm:$0xff] }
  0x4f   :  { %584 = vmatprep.subr.bf16.mxu0 %v812_v0  ;;  %v189_v20 = vld [vmem:[#allocation7 + $0x28] sm:$0xff]  ;;  %v591_v21 = vpack.c.bf16 %v97_v17, %v96_v16  ;;  %v98_v22 = vld [vmem:[#allocation5 + $0x40] sm:$0xff]  ;;  %v190_v25 = vld [vmem:[#allocation7 + $0x30] sm:$0xff] }
  0x50   :  { %607 = vmatpush3.bf16.msra.mxu1 %v606_v15  ;;  %v99_v23 = vld [vmem:[#allocation5 + $0x48] sm:$0xff]  ;;  %v612_v24 = vpack.c.bf16 %v189_v20, %v188_v19  ;;  %v191_v26 = vld [vmem:[#allocation7 + $0x38] sm:$0xff]  ;;  %v100_v28 = vld [vmem:[#allocation5 + $0x50] sm:$0xff] }
  0x51   :  { %608 = vmatprep.subr.bf16.mxu1 %v812_v0  ;;  %v594_v27 = vpack.c.bf16 %v99_v23, %v98_v22  ;;  %v101_v29 = vld [vmem:[#allocation5 + $0x58] sm:$0xff]  ;;  %v615_v30 = vpack.c.bf16 %v191_v26, %v190_v25  ;;  %v192_v31 = vld [vmem:[#allocation7 + $0x40] sm:$0xff]  ;;  %v193_v32 = vld [vmem:[#allocation7 + $0x48] sm:$0xff] }
  0x52   :  { %586 = vmatpush3.bf16.msra.mxu0 %v585_v7  ;;  %v597_v33 = vpack.c.bf16 %v101_v29, %v100_v28  ;;  %v102_v34 = vld [vmem:[#allocation5 + $0x60] sm:$0xff]  ;;  %v103_v35 = vld [vmem:[#allocation5 + $0x68] sm:$0xff]  ;;  %v618_v36 = vpack.c.bf16 %v193_v32, %v192_v31  ;;  %v194_v37 = vld [vmem:[#allocation7 + $0x50] sm:$0xff] }
  0x53   :  { %587 = vmatprep.subr.bf16.mxu0 %v812_v0  ;;  %v195_v38 = vld [vmem:[#allocation7 + $0x58] sm:$0xff]  ;;  %v600_v39 = vpack.c.bf16 %v103_v35, %v102_v34  ;;  %v104_v40 = vld [vmem:[#allocation5 + $0x70] sm:$0xff]  ;;  %v196_v43 = vld [vmem:[#allocation7 + $0x60] sm:$0xff] }
  0x54   :  { %610 = vmatpush3.bf16.msra.mxu1 %v609_v18  ;;  %v105_v41 = vld [vmem:[#allocation5 + $0x78] sm:$0xff]  ;;  %v621_v42 = vpack.c.bf16 %v195_v38, %v194_v37  ;;  %v197_v44 = vld [vmem:[#allocation7 + $0x68] sm:$0xff]  ;;  %v198_v48 = vld [vmem:[#allocation7 + $0x70] sm:$0xff] }
  0x55   :  { %611 = vmatprep.subr.bf16.mxu1 %v812_v0  ;;  %v603_v45 = vpack.c.bf16 %v105_v41, %v104_v40  ;;  %v624_v46 = vpack.c.bf16 %v197_v44, %v196_v43  ;;  %v89_v47 = vld [vmem:[#allocation2] sm:$0xff]  ;;  %v294_v51 = vld [vmem:[#allocation8] sm:$0xff]  ;;  %v295_v52 = vld [vmem:[#allocation8 + $0x8] sm:$0xff] }
  0x56   :  { %589 = vmatpush3.bf16.msra.mxu0 %v588_v14  ;;  %v199_v49 = vld [vmem:[#allocation7 + $0x78] sm:$0xff]  ;;  %v296_v53 = vld [vmem:[#allocation8 + $0x10] sm:$0xff]  ;;  %v630_v54 = vpack.c.bf16 %v295_v52, %v294_v51  ;;  %v298_v57 = vld [vmem:[#allocation8 + $0x20] sm:$0xff] }
  0x57   :  { %590 = vmatprep.subr.bf16.mxu0 %v812_v0  ;;  %v627_v50 = vpack.c.bf16 %v199_v49, %v198_v48  ;;  %v297_v55 = vld [vmem:[#allocation8 + $0x18] sm:$0xff]  ;;  %v299_v58 = vld [vmem:[#allocation8 + $0x28] sm:$0xff]  ;;  %v300_v60 = vld [vmem:[#allocation8 + $0x30] sm:$0xff] }
  0x58   :  { %613 = vmatpush3.bf16.msra.mxu1 %v612_v24  ;;  %v633_v56 = vpack.c.bf16 %v297_v55, %v296_v53  ;;  %v636_v59 = vpack.c.bf16 %v299_v58, %v298_v57  ;;  %v301_v61 = vld [vmem:[#allocation8 + $0x38] sm:$0xff]  ;;  %v302_v63 = vld [vmem:[#allocation8 + $0x40] sm:$0xff]  ;;  %v304_v3 = vld [vmem:[#allocation8 + $0x50] sm:$0xff] }
  0x59   :  { %614 = vmatprep.subr.bf16.mxu1 %v812_v0  ;;  %v639_v62 = vpack.c.bf16 %v301_v61, %v300_v60  ;;  %v305_v4 = vld [vmem:[#allocation8 + $0x58] sm:$0xff]  ;;  %v306_v11 = vld [vmem:[#allocation8 + $0x60] sm:$0xff]  ;;  %v307_v12 = vld [vmem:[#allocation8 + $0x68] sm:$0xff] }
  0x5a   :  { %592 = vmatpush3.bf16.msra.mxu0 %v591_v21  ;;  %v645_v5 = vpack.c.bf16 %v305_v4, %v304_v3  ;;  %v420_v6 = vld [vmem:[%s1000_s2] ss:$0 sm:$0xff]  ;;  %v648_v13 = vpack.c.bf16 %v307_v12, %v306_v11  ;;  %v308_v14 = vld [vmem:[#allocation8 + $0x70] sm:$0xff] }
  0x5b   :  { %593 = vmatprep.subr.bf16.mxu0 %v812_v0  ;;  %v309_v15 = vld [vmem:[#allocation8 + $0x78] sm:$0xff] }
  0x5c   :  { %616 = vmatpush3.bf16.msra.mxu1 %v615_v30  ;;  %v651_v16 = vpack.c.bf16 %v309_v15, %v308_v14  ;;  %v421_v17 = vld [vmem:[%s1002_s4] ss:$0 sm:$0xff]  ;;  %s752_s4 = scalar_lea.vmem %s406_s29, 128 }
  0x5d   :  { %617 = vmatprep.subr.bf16.mxu1 %v812_v0  ;;  %v422_v21 = vld [vmem:[%s1003_s5] ss:$0 sm:$0xff]  ;;  %p753_p4 = scmp.ne.s32.totalorder %s406_s29, %s752_s4  ;;  %p758_p6 = scmp.lt.s32.totalorder %s752_s4, %s752_s4 }
  0x5e   :  { %595 = vmatpush3.bf16.msra.mxu0 %v594_v27 }
  0x5f   :  { %596 = vmatprep.subr.bf16.mxu0 %v812_v0  ;;  %p759_p7 = por %p758_p6, %p757_p5 }
  0x60   :  { %619 = vmatpush3.bf16.msra.mxu1 %v618_v36 }
  0x61   :  { %620 = vmatprep.subr.bf16.mxu1 %v812_v0  ;;  %p760_p8 = pnand %p759_p7, %p753_p4 }
  0x62   :  { %598 = vmatpush3.bf16.msra.mxu0 %v597_v33 }
  0x63   :  { %599 = vmatprep.subr.bf16.mxu0 %v812_v0 }
  0x64   :  { %622 = vmatpush3.bf16.msra.mxu1 %v621_v42 }
  0x65   :  { %623 = vmatprep.subr.bf16.mxu1 %v812_v0 }
  0x66   :  { %601 = vmatpush3.bf16.msra.mxu0 %v600_v39 }
  0x67   :  { %602 = vmatprep.subr.bf16.mxu0 %v812_v0 }
  0x68   :  { %625 = vmatpush3.bf16.msra.mxu1 %v624_v46 }
  0x69   :  { %626 = vmatprep.subr.bf16.mxu1 %v812_v0 }
  0x6a   :  { %604 = vmatpush3.bf16.msra.mxu0 %v603_v45 }
  0x6b   :  { %629 = vmatprep.subr.bf16.mxu0 %v812_v0 }
  0x6c   :  { %628 = vmatpush3.bf16.msra.mxu1 %v627_v50 }
  0x6d   :  { %509 = vmatmul.mubr.f32.vlgmr.msra.gmra.mrb[0].mxu0 %v89_v47 }
  0x6e   :  { %578 = vmatprep.mubr.msk.f32.mxu0 %vm813_vm0, %v814_v1  ;;  %631 = vmatpush3.bf16.msra.mxu0 %v630_v54  ;;  %v303_v1 = vld [vmem:[#allocation8 + $0x48] sm:$0xff] }
  0x6f   :  { %632 = vmatprep.subr.bf16.mxu0 %v812_v0  ;;  %v642_v2 = vpack.c.bf16 %v303_v1, %v302_v63 }
  0x72   :  { %634 = vmatpush3.bf16.msra.mxu0 %v633_v56 }
  0x73   :  { %635 = vmatprep.subr.bf16.mxu0 %v812_v0 }
  0x76   :  { %637 = vmatpush3.bf16.msra.mxu0 %v636_v59 }
  0x77   :  { %638 = vmatprep.subr.bf16.mxu0 %v812_v0 }
  0x7a   :  { %640 = vmatpush3.bf16.msra.mxu0 %v639_v62 }
  0x7b   :  { %641 = vmatprep.subr.bf16.mxu0 %v812_v0 }
  0x7e   :  { %643 = vmatpush3.bf16.msra.mxu0 %v642_v2 }
  0x7f   :  { %644 = vmatprep.subr.bf16.mxu0 %v812_v0 }
  0x82   :  { %646 = vmatpush3.bf16.msra.mxu0 %v645_v5 }
  0x83   :  { %647 = vmatprep.subr.bf16.mxu0 %v812_v0 }
  0x86   :  { %649 = vmatpush3.bf16.msra.mxu0 %v648_v13 }
  0x87   :  { %650 = vmatprep.subr.bf16.mxu0 %v812_v0  ;;  %v423_v0 = vld [vmem:[%s1004_s6] ss:$0 sm:$0xff] }
  0x8a   :  { %652 = vmatpush3.bf16.msra.mxu0 %v651_v16 }
 0x140   :  { %v179_v7 = vpop.f32.mrb[0].mxu0 }
 0x141   :  { %v180_v8 = vadd.f32 %v420_v6, %v179_v7  ;;  %v510_v9 = vpop.f32.mrb[1].mxu0 }
 0x143   :  { %v183_v10 = vmax.f32 %v180_v8, 0.0 }
 0x145   :  { %544 = vmatmul.mubr.f32.vlgmr.msra.gmra.mrb[0].mxu1 %v183_v10 }
 0x218   :  { %v273_v18 = vpop.f32.mrb[0].mxu1 }
 0x219   :  { %v274_v19 = vadd.f32 %v421_v17, %v273_v18  ;;  %v545_v20 = vpop.f32.mrb[1].mxu1 }
 0x21b   :  { %v277_v22 = vmax.f32 %v274_v19, 0.0 }
 0x21d   :  { %v285_v23 = vmul.f32 %v422_v21, %v277_v22 }
 0x21f   :  { %v293_v24 = vadd.f32 %v423_v0, %v285_v23 }
 0x221   :  { %388 = vst [vmem:[#allocation11] sm:$0xff] %v293_v24  ;;  %579 = vmatmul.mubr.f32.vlgmr.msra.gmra.mrb[2].mxu0 %v293_v24 }
 0x222   :  { %763 = shalt.err (!%p760_p8)
}
 0x223   :  { %s764_s0 = scalar_lea.hbm %s1008_s10, 128 }
 0x224   :  { %p765_p9 = scmp.ne.s32.totalorder %s1008_s10, %s764_s0  ;;  %p768_p10 = scmp.lt.u32.totalorder %s764_s0, %s1008_s10 }
 0x226   :  { %p770_p11 = pnand %p768_p10, %p765_p9 }
 0x228   :  { %773 = shalt.err (!%p770_p11)
}
 0x229   :  { %408 = dma.vmem_to_hbm [thread:$0]  %s406_s29, 128, %s1008_s10, [#allocation12]   ;;  %v424_v25 = vld [vmem:[%s1006_s8] ss:$0 sm:$0xff] }
 0x22a   :  { %s816_s1 = smov [#allocation10]  }
 0x22b   :  { %s395_s14 = sshll.u32 %s816_s1, 4  ;;  %s396_s14 = int_to_ptr.vmem [resolvable:$true] %s395_s14 }
 0x22c   :  { %s774_s19 = scalar_lea.vmem %s396_s14, 128  ;;  %p779_p13 = scmp.lt.s32.totalorder %s396_s14, %s396_s14 }
 0x22d   :  { %p775_p12 = scmp.ne.s32.totalorder %s396_s14, %s774_s19  ;;  %p780_p0 = scmp.lt.s32.totalorder %s774_s19, %s774_s19 }
 0x22f   :  { %p781_p1 = por %p780_p0, %p779_p13 }
 0x231   :  { %p782_p2 = pnand %p781_p1, %p775_p12 }
 0x2f4   :  { %v383_v26 = vpop.f32.mrb[2].mxu0 }
 0x2f5   :  { %v384_v27 = vadd.f32 %v424_v25, %v383_v26  ;;  %v580_v28 = vpop.f32.mrb[3].mxu0 }
 0x2f7   :  { %387 = vst [vmem:[#allocation10] sm:$0xff] %v384_v27 }
 0x2f8   :  { %785 = shalt.err (!%p782_p2)
}
 0x2f9   :  { %s786_s3 = scalar_lea.hbm %s1007_s9, 128 }
 0x2fa   :  { %p787_p3 = scmp.ne.s32.totalorder %s1007_s9, %s786_s3  ;;  %p790_p4 = scmp.lt.u32.totalorder %s786_s3, %s1007_s9 }
 0x2fc   :  { %p792_p5 = pnand %p790_p4, %p787_p3 }
 0x2fe   :  { %795 = shalt.err (!%p792_p5)
}
 0x2ff   :  { %398 = dma.vmem_to_hbm [thread:$0]  %s396_s14, 128, %s1007_s9, [#allocation4]  }
 0x300   :  { %802 = dma.done.wait [#allocation4], 128  }
 0x301   :  { %803 = vsyncadd [#allocation4], 4294967168 }
 0x302   :  { %804 = dma.done.wait [#allocation12], 128  }
 0x303   :  { %805 = vsyncadd [#allocation12], 4294967168 }
 0x304   :  { %415 = vsyncpa [#allocation3], 1 }
 0x305   :  { %416 = vsyncpa [#allocation6], 1 }
 0x306   :  { %417 = vsyncpa [#allocation9], 1 }
 0x307   :  { %418 = vsyncpa [#allocation4], 1 }
 0x308   :  { %419 = vsyncpa [#allocation12], 1 }

</bundles_post_ra>
